<compile_context>
chip_gen: v7x
topology: tpu7x:2x2x1
jax: 0.10.0
libtpu: 0.0.40
codegen_flags: <defaults>
</compile_context>

<pallas_src>
import jax
import jax.numpy as jnp
from jax.experimental import pallas as pl
from jax.experimental.pallas import tpu as pltpu

LANES = 128
MAX_BLOCK_ROWS = 4096   # (4096, 128) f32 block = 2 MiB; x2 inputs x2 buffers = 8 MiB VMEM
CHUNK_ROWS = 64         # rows folded per inner iteration (8 vregs/quantity, stays in regs)
NUM_SPLITS = 2          # leading "parallel" axis -> both TensorCores on v7x
_PAD_LOGIT = -100.0     # masked rows: bce term ~ 0, sigmoid ~ 0, target = 0


def _round_up(x, m):
    return -(-x // m) * m


def _cdiv(a, b):
    return -(-a // b)


def _fold_rows(v, chunk):
    """(chunk, 128) -> (8, 128) by summing 8-row groups; pure vreg adds."""
    part = v[0:8, :]
    for g in range(1, chunk // 8):
        part = part + v[g * 8:(g + 1) * 8, :]
    return part


def _make_bce_dice_kernel(rows, block_rows, steps, chunk, num_chunks, needs_mask):
    """Builds the reduction kernel for a (rows, 128) slab with static tiling."""

    def bce_dice_sums_kernel(x_ref, t_ref, out_ref, acc_bce, acc_s, acc_t, acc_st):
        p = pl.program_id(0)
        i = pl.program_id(1)

        @pl.when(i == 0)
        def _init():
            acc_bce[...] = jnp.zeros_like(acc_bce)
            acc_s[...] = jnp.zeros_like(acc_s)
            acc_t[...] = jnp.zeros_like(acc_t)
            acc_st[...] = jnp.zeros_like(acc_st)

        if needs_mask:
            # Rows still valid at the start of this logical block; may be <= 0
            # for fully out-of-range blocks of the rectangularized grid.
            rem_block = rows - (p * steps + i) * block_rows
            row_iota = jax.lax.broadcasted_iota(jnp.int32, (chunk, LANES), 0)

        def process(off):
            x = x_ref[pl.ds(off, chunk), :].astype(jnp.float32)
            t = t_ref[pl.ds(off, chunk), :].astype(jnp.float32)
            if needs_mask:
                valid = row_iota < (rem_block - off)
                x = jnp.where(valid, x, _PAD_LOGIT)   # bce(−100,0)=0, sigmoid≈0
                t = jnp.where(valid, t, 0.0)

            # Shared transcendental: e = exp(-|x|) feeds both the numerically
            # stable BCEWithLogits term  max(x,0) - x*t + log1p(e)  and sigmoid.
            e = jnp.exp(-jnp.abs(x))
            bce = jnp.maximum(x, 0.0) - x * t + jnp.log1p(e)

            d = 1.0 + e
            inv = pl.reciprocal(d, approx=True)
            inv = inv * (2.0 - d * inv)               # one Newton step (VPU, cheap)
            s = jnp.where(x >= 0.0, inv, e * inv)     # sigmoid(x) from shared exp

            # Register-level fold to one vreg per quantity, then a single
            # (8, 128) accumulator read-modify-write per quantity per chunk.
            acc_bce[...] += _fold_rows(bce, chunk)
            acc_s[...] += _fold_rows(s, chunk)
            acc_t[...] += _fold_rows(t, chunk)
            acc_st[...] += _fold_rows(s * t, chunk)

        if num_chunks == 1:
            process(0)
        else:
            def body(c, carry):
                process(pl.multiple_of(c * chunk, chunk))
                return carry
            jax.lax.fori_loop(0, num_chunks, body, 0)

        @pl.when(i == steps - 1)
        def _finalize():
            out_ref[0, 0] = jnp.sum(acc_bce[...])
            out_ref[0, 1] = jnp.sum(acc_s[...])
            out_ref[0, 2] = jnp.sum(acc_t[...])
            out_ref[0, 3] = jnp.sum(acc_st[...])

    return bce_dice_sums_kernel


def _pallas_partial_sums(x2, t2):
    """f32[4] = [sum(bce), sum(sigmoid), sum(t), sum(sigmoid*t)] of a lane-dense
    (rows, 128) slab, reduced on-chip."""
    rows = x2.shape[0]
    rows8 = _round_up(rows, 8)
    if rows8 <= CHUNK_ROWS:
        chunk = rows8
        block_rows = rows8
    else:
        chunk = CHUNK_ROWS
        block_rows = min(MAX_BLOCK_ROWS, _round_up(rows8, CHUNK_ROWS))
    num_chunks = block_rows // chunk

    total_blocks = _cdiv(rows, block_rows)
    num_splits = NUM_SPLITS if total_blocks >= NUM_SPLITS else 1
    steps = _cdiv(total_blocks, num_splits)
    needs_mask = (num_splits * steps * block_rows) != rows
    last_block = total_blocks - 1

    kernel = _make_bce_dice_kernel(rows, block_rows, steps, chunk, num_chunks, needs_mask)

    def in_index(p, i):
        # Clamp so the rectangular grid never requests a block past the data;
        # fully out-of-range logical blocks are masked to zero contribution.
        return (jnp.minimum(p * steps + i, last_block), 0)

    in_spec = pl.BlockSpec((block_rows, LANES), in_index)

    sums = pl.pallas_call(
        kernel,
        out_shape=jax.ShapeDtypeStruct((num_splits, 4), jnp.float32),
        grid=(num_splits, steps),
        in_specs=[in_spec, in_spec],
        out_specs=pl.BlockSpec(
            (1, 4), lambda p, i: (p, 0), memory_space=pltpu.MemorySpace.SMEM),
        scratch_shapes=[pltpu.VMEM((8, LANES), jnp.float32)] * 4,
        compiler_params=pltpu.CompilerParams(
            dimension_semantics=("parallel", "arbitrary")),
    )(x2, t2)
    return jnp.sum(sums, axis=0)


def _jax_partial_sums(x, t):
    """Same four partial sums in plain JAX; only used for the < 128-element lane
    tail of shapes whose numel is not a multiple of 128."""
    x = x.astype(jnp.float32)
    t = t.astype(jnp.float32)
    bce = jnp.maximum(x, 0.0) - x * t + jnp.log1p(jnp.exp(-jnp.abs(x)))
    s = jax.nn.sigmoid(x)
    return jnp.stack([jnp.sum(bce), jnp.sum(s), jnp.sum(t), jnp.sum(s * t)])


@jax.jit
def bce_dice_loss(logits, targets):
    """JAX/Pallas equivalent of BCEDiceLoss.forward(input, target)."""
    assert logits.shape == targets.shape
    n = int(logits.size)
    assert n > 0

    xf = logits.reshape(-1)
    tf = targets.reshape(-1)      # native dtype; cast happens in-kernel
    rows = n // LANES
    main_n = rows * LANES

    pieces = []
    if rows > 0:
        if main_n == n:           # free reshape, no copy (common case)
            x2, t2 = xf.reshape(rows, LANES), tf.reshape(rows, LANES)
        else:                     # rare ragged case: 128-aligned prefix
            x2 = xf[:main_n].reshape(rows, LANES)
            t2 = tf[:main_n].reshape(rows, LANES)
        pieces.append(_pallas_partial_sums(x2, t2))
    if main_n != n:               # < 128-element lane tail in plain JAX
        pieces.append(_jax_partial_sums(xf[main_n:], tf[main_n:]))

    total = pieces[0]
    for extra in pieces[1:]:
        total = total + extra

    bce_sum, s_sum, t_sum, inter = total[0], total[1], total[2], total[3]
    smooth = jnp.float32(1.0)
    bce_mean = bce_sum / jnp.float32(n)            # BCEWithLogitsLoss(reduction='mean')
    dice = (2.0 * inter + smooth) / (s_sum + t_sum + smooth)
    return bce_mean + (1.0 - dice)


def _reference(logits, targets):
    x = logits.astype(jnp.float32)
    t = targets.astype(jnp.float32)
    bce = jnp.mean(jnp.maximum(x, 0.0) - x * t + jnp.log1p(jnp.exp(-jnp.abs(x))))
    s = jax.nn.sigmoid(x).reshape(-1)
    tf = t.reshape(-1)
    dice = (2.0 * jnp.sum(s * tf) + 1.0) / (jnp.sum(s) + jnp.sum(tf) + 1.0)
    return bce + (1.0 - dice)


if __name__ == "__main__":
    key = jax.random.PRNGKey(0)
    cases = [
        (2, 4, 16, 16),       # canonical small NCHW input (n % 128 == 0, one block)
        (2, 3, 7, 11),        # ragged: masked partial block + plain-JAX lane tail
        (2, 1, 1025, 256),    # multi-block: 2 row-blocks, chunked inner loop, mask
    ]
    for shape in cases:
        key, k1, k2 = jax.random.split(key, 3)
        x = jax.random.normal(k1, shape, dtype=jnp.float32)
        tgt = jax.random.bernoulli(k2, 0.5, shape).astype(jnp.float32)
        out = jax.block_until_ready(bce_dice_loss(x, tgt))
        ref = jax.block_until_ready(_reference(x, tgt))
        assert jnp.allclose(out, ref, atol=5e-5, rtol=5e-5), (shape, out, ref)
    print("KERNEL_OK")
</pallas_src>

<mosaic_0001>
module attributes {stable_mosaic.version = 11 : i64} {
  func.func @bce_dice_sums_kernel(%arg0: i32, %arg1: i32, %arg2: memref<16x128xf32, #tpu.memory_space<vmem>>, %arg3: memref<16x128xf32, #tpu.memory_space<vmem>>, %arg4: memref<1x4xf32, #tpu.memory_space<smem>>, %arg5: memref<8x128xf32, #tpu.memory_space<vmem>>, %arg6: memref<8x128xf32, #tpu.memory_space<vmem>>, %arg7: memref<8x128xf32, #tpu.memory_space<vmem>>, %arg8: memref<8x128xf32, #tpu.memory_space<vmem>>) attributes {dimension_semantics = [#tpu.dimension_semantics<parallel>, #tpu.dimension_semantics<arbitrary>], iteration_bounds = array<i64: 1, 1>, scalar_prefetch = 0 : i64, scratch_operands = 4 : i64, tpu.core_type = #tpu.core_type<tc>, window_params = [{transform_indices = @transform_0, window_bounds = array<i64: 16, 128>}, {transform_indices = @transform_1, window_bounds = array<i64: 16, 128>}, {transform_indices = @transform_2, window_bounds = array<i64: 1, 4>}]} {
    %c0_i32 = arith.constant 0 : i32
    %0 = arith.cmpi eq, %arg1, %c0_i32 : i32
    %1 = arith.extui %0 : i1 to i32
    %c0_i32_0 = arith.constant 0 : i32
    %2 = arith.cmpi ne, %1, %c0_i32_0 : i32
    scf.if %2 {
      %cst_26 = arith.constant 0.000000e+00 : f32
      %54 = vector.broadcast %cst_26 : f32 to vector<8x128xf32>
      %c0_27 = arith.constant 0 : index
      %c0_28 = arith.constant 0 : index
      %55 = vector.load %arg5[%c0_27, %c0_28] : memref<8x128xf32, #tpu.memory_space<vmem>>, vector<8x128xf32>
      tpu.vector_store %arg5[%c0_27, %c0_28], %54 {strides = array<i32>} : memref<8x128xf32, #tpu.memory_space<vmem>>, vector<8x128xf32>,
      %cst_29 = arith.constant 0.000000e+00 : f32
      %56 = vector.broadcast %cst_29 : f32 to vector<8x128xf32>
      %c0_30 = arith.constant 0 : index
      %c0_31 = arith.constant 0 : index
      %57 = vector.load %arg6[%c0_30, %c0_31] : memref<8x128xf32, #tpu.memory_space<vmem>>, vector<8x128xf32>
      tpu.vector_store %arg6[%c0_30, %c0_31], %56 {strides = array<i32>} : memref<8x128xf32, #tpu.memory_space<vmem>>, vector<8x128xf32>,
      %cst_32 = arith.constant 0.000000e+00 : f32
      %58 = vector.broadcast %cst_32 : f32 to vector<8x128xf32>
      %c0_33 = arith.constant 0 : index
      %c0_34 = arith.constant 0 : index
      %59 = vector.load %arg7[%c0_33, %c0_34] : memref<8x128xf32, #tpu.memory_space<vmem>>, vector<8x128xf32>
      tpu.vector_store %arg7[%c0_33, %c0_34], %58 {strides = array<i32>} : memref<8x128xf32, #tpu.memory_space<vmem>>, vector<8x128xf32>,
      %cst_35 = arith.constant 0.000000e+00 : f32
      %60 = vector.broadcast %cst_35 : f32 to vector<8x128xf32>
      %c0_36 = arith.constant 0 : index
      %c0_37 = arith.constant 0 : index
      %61 = vector.load %arg8[%c0_36, %c0_37] : memref<8x128xf32, #tpu.memory_space<vmem>>, vector<8x128xf32>
      tpu.vector_store %arg8[%c0_36, %c0_37], %60 {strides = array<i32>} : memref<8x128xf32, #tpu.memory_space<vmem>>, vector<8x128xf32>,
    } else {
    }
    %c0 = arith.constant 0 : index
    %c0_1 = arith.constant 0 : index
    %3 = vector.load %arg2[%c0, %c0_1] : memref<16x128xf32, #tpu.memory_space<vmem>>, vector<16x128xf32>
    %c0_2 = arith.constant 0 : index
    %c0_3 = arith.constant 0 : index
    %4 = vector.load %arg3[%c0_2, %c0_3] : memref<16x128xf32, #tpu.memory_space<vmem>>, vector<16x128xf32>
    %5 = math.absf %3 : vector<16x128xf32>
    %cst = arith.constant 0.000000e+00 : f32
    %6 = vector.broadcast %cst : f32 to vector<16x128xf32>
    %7 = arith.subf %6, %5 : vector<16x128xf32>
    %8 = math.exp %7 : vector<16x128xf32>
    %cst_4 = arith.constant 0.000000e+00 : f32
    %9 = vector.broadcast %cst_4 : f32 to vector<16x128xf32>
    %10 = arith.maximumf %3, %9 : vector<16x128xf32>
    %11 = arith.mulf %3, %4 : vector<16x128xf32>
    %12 = arith.subf %10, %11 : vector<16x128xf32>
    %13 = math.log1p %8 : vector<16x128xf32>
    %14 = arith.addf %12, %13 : vector<16x128xf32>
    %cst_5 = arith.constant 1.000000e+00 : f32
    %15 = vector.broadcast %cst_5 : f32 to vector<16x128xf32>
    %16 = arith.addf %15, %8 : vector<16x128xf32>
    %17 = tpu.reciprocal %16 {approx = true} : vector<16x128xf32> -> vector<16x128xf32>
    %18 = arith.mulf %16, %17 : vector<16x128xf32>
    %cst_6 = arith.constant 2.000000e+00 : f32
    %19 = vector.broadcast %cst_6 : f32 to vector<16x128xf32>
    %20 = arith.subf %19, %18 : vector<16x128xf32>
    %21 = arith.mulf %17, %20 : vector<16x128xf32>
    %cst_7 = arith.constant 0.000000e+00 : f32
    %22 = vector.broadcast %cst_7 : f32 to vector<16x128xf32>
    %23 = arith.cmpf oge, %3, %22 : vector<16x128xf32>
    %24 = arith.mulf %8, %21 : vector<16x128xf32>
    %25 = arith.select %23, %21, %24 : vector<16x128xi1>, vector<16x128xf32>
    %c0_8 = arith.constant 0 : index
    %c0_9 = arith.constant 0 : index
    %26 = vector.load %arg5[%c0_8, %c0_9] : memref<8x128xf32, #tpu.memory_space<vmem>>, vector<8x128xf32>
    %27 = vector.extract_strided_slice %14 {offsets = [0, 0], sizes = [8, 128], strides = [1, 1]} : vector<16x128xf32> to vector<8x128xf32>
    %28 = vector.extract_strided_slice %14 {offsets = [8, 0], sizes = [8, 128], strides = [1, 1]} : vector<16x128xf32> to vector<8x128xf32>
    %29 = arith.addf %27, %28 : vector<8x128xf32>
    %30 = arith.addf %26, %29 : vector<8x128xf32>
    %c0_10 = arith.constant 0 : index
    %c0_11 = arith.constant 0 : index
    %31 = vector.load %arg5[%c0_10, %c0_11] : memref<8x128xf32, #tpu.memory_space<vmem>>, vector<8x128xf32>
    tpu.vector_store %arg5[%c0_10, %c0_11], %30 {strides = array<i32>} : memref<8x128xf32, #tpu.memory_space<vmem>>, vector<8x128xf32>,
    %c0_12 = arith.constant 0 : index
    %c0_13 = arith.constant 0 : index
    %32 = vector.load %arg6[%c0_12, %c0_13] : memref<8x128xf32, #tpu.memory_space<vmem>>, vector<8x128xf32>
    %33 = vector.extract_strided_slice %25 {offsets = [0, 0], sizes = [8, 128], strides = [1, 1]} : vector<16x128xf32> to vector<8x128xf32>
    %34 = vector.extract_strided_slice %25 {offsets = [8, 0], sizes = [8, 128], strides = [1, 1]} : vector<16x128xf32> to vector<8x128xf32>
    %35 = arith.addf %33, %34 : vector<8x128xf32>
    %36 = arith.addf %32, %35 : vector<8x128xf32>
    %c0_14 = arith.constant 0 : index
    %c0_15 = arith.constant 0 : index
    %37 = vector.load %arg6[%c0_14, %c0_15] : memref<8x128xf32, #tpu.memory_space<vmem>>, vector<8x128xf32>
    tpu.vector_store %arg6[%c0_14, %c0_15], %36 {strides = array<i32>} : memref<8x128xf32, #tpu.memory_space<vmem>>, vector<8x128xf32>,
    %c0_16 = arith.constant 0 : index
    %c0_17 = arith.constant 0 : index
    %38 = vector.load %arg7[%c0_16, %c0_17] : memref<8x128xf32, #tpu.memory_space<vmem>>, vector<8x128xf32>
    %39 = vector.extract_strided_slice %4 {offsets = [0, 0], sizes = [8, 128], strides = [1, 1]} : vector<16x128xf32> to vector<8x128xf32>
    %40 = vector.extract_strided_slice %4 {offsets = [8, 0], sizes = [8, 128], strides = [1, 1]} : vector<16x128xf32> to vector<8x128xf32>
    %41 = arith.addf %39, %40 : vector<8x128xf32>
    %42 = arith.addf %38, %41 : vector<8x128xf32>
    %c0_18 = arith.constant 0 : index
    %c0_19 = arith.constant 0 : index
    %43 = vector.load %arg7[%c0_18, %c0_19] : memref<8x128xf32, #tpu.memory_space<vmem>>, vector<8x128xf32>
    tpu.vector_store %arg7[%c0_18, %c0_19], %42 {strides = array<i32>} : memref<8x128xf32, #tpu.memory_space<vmem>>, vector<8x128xf32>,
    %c0_20 = arith.constant 0 : index
    %c0_21 = arith.constant 0 : index
    %44 = vector.load %arg8[%c0_20, %c0_21] : memref<8x128xf32, #tpu.memory_space<vmem>>, vector<8x128xf32>
    %45 = arith.mulf %25, %4 : vector<16x128xf32>
    %46 = vector.extract_strided_slice %45 {offsets = [0, 0], sizes = [8, 128], strides = [1, 1]} : vector<16x128xf32> to vector<8x128xf32>
    %47 = vector.extract_strided_slice %45 {offsets = [8, 0], sizes = [8, 128], strides = [1, 1]} : vector<16x128xf32> to vector<8x128xf32>
    %48 = arith.addf %46, %47 : vector<8x128xf32>
    %49 = arith.addf %44, %48 : vector<8x128xf32>
    %c0_22 = arith.constant 0 : index
    %c0_23 = arith.constant 0 : index
    %50 = vector.load %arg8[%c0_22, %c0_23] : memref<8x128xf32, #tpu.memory_space<vmem>>, vector<8x128xf32>
    tpu.vector_store %arg8[%c0_22, %c0_23], %49 {strides = array<i32>} : memref<8x128xf32, #tpu.memory_space<vmem>>, vector<8x128xf32>,
    %c0_i32_24 = arith.constant 0 : i32
    %51 = arith.cmpi eq, %arg1, %c0_i32_24 : i32
    %52 = arith.extui %51 : i1 to i32
    %c0_i32_25 = arith.constant 0 : i32
    %53 = arith.cmpi ne, %52, %c0_i32_25 : i32
    scf.if %53 {
      %c0_26 = arith.constant 0 : index
      %c0_27 = arith.constant 0 : index
      %54 = vector.load %arg5[%c0_26, %c0_27] : memref<8x128xf32, #tpu.memory_space<vmem>>, vector<8x128xf32>
      %55 = vector.shape_cast %54 : vector<8x128xf32> to vector<1x8x128xf32>
      %cst_28 = arith.constant dense<0.000000e+00> : vector<1xf32>
      %56 = vector.multi_reduction <add>, %55, %cst_28 [1, 2] : vector<1x8x128xf32> to vector<1xf32>
      %57 = vector.shape_cast %56 : vector<1xf32> to vector<1x1x1xf32>
      %58 = vector.extract %57[0, 0, 0] : f32 from vector<1x1x1xf32>
      %c0_29 = arith.constant 0 : index
      %c0_30 = arith.constant 0 : index
      %59 = memref.load %arg4[%c0_29, %c0_30] : memref<1x4xf32, #tpu.memory_space<smem>>
      memref.store %58, %arg4[%c0_29, %c0_30] : memref<1x4xf32, #tpu.memory_space<smem>>
      %c0_31 = arith.constant 0 : index
      %c0_32 = arith.constant 0 : index
      %60 = vector.load %arg6[%c0_31, %c0_32] : memref<8x128xf32, #tpu.memory_space<vmem>>, vector<8x128xf32>
      %61 = vector.shape_cast %60 : vector<8x128xf32> to vector<1x8x128xf32>
      %cst_33 = arith.constant dense<0.000000e+00> : vector<1xf32>
      %62 = vector.multi_reduction <add>, %61, %cst_33 [1, 2] : vector<1x8x128xf32> to vector<1xf32>
      %63 = vector.shape_cast %62 : vector<1xf32> to vector<1x1x1xf32>
      %64 = vector.extract %63[0, 0, 0] : f32 from vector<1x1x1xf32>
      %c0_34 = arith.constant 0 : index
      %c1 = arith.constant 1 : index
      %65 = memref.load %arg4[%c0_34, %c1] : memref<1x4xf32, #tpu.memory_space<smem>>
      memref.store %64, %arg4[%c0_34, %c1] : memref<1x4xf32, #tpu.memory_space<smem>>
      %c0_35 = arith.constant 0 : index
      %c0_36 = arith.constant 0 : index
      %66 = vector.load %arg7[%c0_35, %c0_36] : memref<8x128xf32, #tpu.memory_space<vmem>>, vector<8x128xf32>
      %67 = vector.shape_cast %66 : vector<8x128xf32> to vector<1x8x128xf32>
      %cst_37 = arith.constant dense<0.000000e+00> : vector<1xf32>
      %68 = vector.multi_reduction <add>, %67, %cst_37 [1, 2] : vector<1x8x128xf32> to vector<1xf32>
      %69 = vector.shape_cast %68 : vector<1xf32> to vector<1x1x1xf32>
      %70 = vector.extract %69[0, 0, 0] : f32 from vector<1x1x1xf32>
      %c0_38 = arith.constant 0 : index
      %c2 = arith.constant 2 : index
      %71 = memref.load %arg4[%c0_38, %c2] : memref<1x4xf32, #tpu.memory_space<smem>>
      memref.store %70, %arg4[%c0_38, %c2] : memref<1x4xf32, #tpu.memory_space<smem>>
      %c0_39 = arith.constant 0 : index
      %c0_40 = arith.constant 0 : index
      %72 = vector.load %arg8[%c0_39, %c0_40] : memref<8x128xf32, #tpu.memory_space<vmem>>, vector<8x128xf32>
      %73 = vector.shape_cast %72 : vector<8x128xf32> to vector<1x8x128xf32>
      %cst_41 = arith.constant dense<0.000000e+00> : vector<1xf32>
      %74 = vector.multi_reduction <add>, %73, %cst_41 [1, 2] : vector<1x8x128xf32> to vector<1xf32>
      %75 = vector.shape_cast %74 : vector<1xf32> to vector<1x1x1xf32>
      %76 = vector.extract %75[0, 0, 0] : f32 from vector<1x1x1xf32>
      %c0_42 = arith.constant 0 : index
      %c3 = arith.constant 3 : index
      %77 = memref.load %arg4[%c0_42, %c3] : memref<1x4xf32, #tpu.memory_space<smem>>
      memref.store %76, %arg4[%c0_42, %c3] : memref<1x4xf32, #tpu.memory_space<smem>>
    } else {
    }
    return
  }
  func.func @transform_0(%arg0: i32, %arg1: i32) -> (i32, i32) {
    %c1_i32 = arith.constant 1 : i32
    %0 = arith.muli %arg0, %c1_i32 : i32
    %1 = arith.addi %0, %arg1 : i32
    %c0_i32 = arith.constant 0 : i32
    %2 = arith.minsi %1, %c0_i32 : i32
    %c0_i32_0 = arith.constant 0 : i32
    %c0_i32_1 = arith.constant 0 : i32
    return %2, %c0_i32_0 : i32, i32
  }
  func.func @transform_1(%arg0: i32, %arg1: i32) -> (i32, i32) {
    %c1_i32 = arith.constant 1 : i32
    %0 = arith.muli %arg0, %c1_i32 : i32
    %1 = arith.addi %0, %arg1 : i32
    %c0_i32 = arith.constant 0 : i32
    %2 = arith.minsi %1, %c0_i32 : i32
    %c0_i32_0 = arith.constant 0 : i32
    %c0_i32_1 = arith.constant 0 : i32
    return %2, %c0_i32_0 : i32, i32
  }
  func.func @transform_2(%arg0: i32, %arg1: i32) -> (i32, i32) {
    %c0_i32 = arith.constant 0 : i32
    %c0_i32_0 = arith.constant 0 : i32
    return %arg0, %c0_i32 : i32, i32
  }
}

</mosaic_0001>

<bundles_post_ra>
// kernel: bce_dice_loss.1
= control target key start
LH: loop header
LB: loop body
LE: loop exit
PB: predicated region body
PF: predicated region fallthrough
CT: control target
= control target key end

     0   :  { %s310_s0 = inlined_call_operand.vmem [shape: f32[16,128], index: 0, kind: input, shape index: {}]   ;;  %s311_s1 = inlined_call_operand.vmem [shape: f32[16,128], index: 1, kind: input, shape index: {}]   ;;  %s312_s2 = inlined_call_operand.vmem [shape: f32[1,4], index: 2, kind: output, shape index: {}]  }
   0x1   :  { %v288_v0 = vld [vmem:[%s311_s1] sm:$0xff]  ;;  %v293_v1 = vld [vmem:[%s311_s1 + $0x8] sm:$0xff] }
   0x2   :  { %v84_v2 = vld [vmem:[%s310_s0] sm:$0xff]  ;;  %v147_v3 = vadd.f32 %v293_v1, %v288_v0  ;;  %v85_v4 = vld [vmem:[%s310_s0 + $0x8] sm:$0xff] }
   0x3   :  { %v88_v5 = vand.u32 2147483647, %v84_v2 }
   0x4   :  { %7 = vsyncpa [#allocation7], 0  ;;  %v89_v6 = vand.u32 2147483647, %v85_v4  ;;  %184 = vadd.xlane.f32.xlu1 %v147_v3  ;;  %v98_v18 = vmul.f32 %v288_v0, %v84_v2  ;;  %v96_v19 = vmax.f32 %v84_v2, 0.0  ;;  %v99_v22 = vmul.f32 %v293_v1, %v85_v4  ;;  %s213_s18 = sshll.u32 %s312_s2, 4  ;;  %s214_s18 = int_to_ptr.vmem [resolvable:$true] %s213_s18 }
   0x5   :  { %v90_v7 = vsub.f32 0.0, %v88_v5  ;;  %v97_v23 = vmax.f32 %v85_v4, 0.0  ;;  %vm132_vm2 = vcmp.ge.f32.partialorder %v84_v2, 0.0  ;;  %vm133_vm3 = vcmp.ge.f32.partialorder %v85_v4, 0.0  ;;  %s255_s22 = scalar_lea.vmem %s214_s18, 16  ;;  %p260_p1 = scmp.lt.s32.totalorder %s214_s18, %s214_s18 }
   0x6   :  { %v91_v8 = vsub.f32 0.0, %v89_v6  ;;  %v100_v27 = vsub.f32 %v96_v19, %v98_v18  ;;  %p256_p0 = scmp.ne.s32.totalorder %s214_s18, %s255_s22  ;;  %p261_p2 = scmp.lt.s32.totalorder %s255_s22, %s255_s22 }
   0x7   :  { %v92_v9 = vmul.f32 1.442695, %v90_v7  ;;  %v101_v30 = vsub.f32 %v97_v23, %v99_v22 }
   0x8   :  { %v94_v10 = vmul.f32 1.442695, %v91_v8  ;;  %p262_p3 = por %p261_p2, %p260_p1 }
   0x9   :  { %243 = vpow2.f32 %v92_v9 }
   0xa   :  { %245 = vpow2.f32 %v94_v10  ;;  %p263_p4 = pnand %p262_p3, %p256_p0 }
  0x13   :  { %v244_v11 = vpop.eup %243 }
  0x14   :  { %v246_v12 = vpop.eup %245  ;;  %v102_v13 = vadd.f32 1.0, %v244_v11  ;;  %v105_v15 = vmul.f32 -0.5, %v244_v11  ;;  %v108_v20 = vand.u32 2147483647, %v244_v11 }
  0x15   :  { %v111_v14 = vadd.f32 1.0, %v246_v12  ;;  %v114_v16 = vmul.f32 -0.5, %v246_v12  ;;  %v117_v24 = vand.u32 2147483647, %v246_v12 }
  0x16   :  { %247 = vlog2.f32 %v102_v13  ;;  %v106_v17 = vadd.f32 1.0, %v105_v15  ;;  %vm109_vm0 = vcmp.lt.f32.partialorder %v108_v20, 0.0004427343 }
  0x17   :  { %249 = vlog2.f32 %v111_v14  ;;  %v115_v21 = vadd.f32 1.0, %v114_v16  ;;  %vm118_vm1 = vcmp.lt.f32.partialorder %v117_v24, 0.0004427343 }
  0x18   :  { %251 = vrcp.f32 %v102_v13  ;;  %v107_v25 = vmul.f32 %v244_v11, %v106_v17 }
  0x19   :  { %253 = vrcp.f32 %v111_v14  ;;  %v116_v28 = vmul.f32 %v246_v12, %v115_v21 }
  0x20   :  { %v248_v26 = vpop.eup %247 }
  0x21   :  { %v250_v29 = vpop.eup %249  ;;  %v104_v31 = vmul.f32 0.6931472, %v248_v26 }
  0x22   :  { %v252_v32 = vpop.eup %251  ;;  %v113_v33 = vmul.f32 0.6931472, %v250_v29 }
  0x23   :  { %v254_v34 = vpop.eup %253  ;;  %v110_v35 = vsel %vm109_vm0, %v107_v25, %v104_v31  ;;  %v126_v36 = vmul.f32 %v252_v32, %v102_v13 }
  0x24   :  { %v119_v37 = vsel %vm118_vm1, %v116_v28, %v113_v33  ;;  %v120_v38 = vadd.f32 %v110_v35, %v100_v27  ;;  %v127_v39 = vmul.f32 %v254_v34, %v111_v14 }
  0x25   :  { %v121_v40 = vadd.f32 %v119_v37, %v101_v30  ;;  %v128_v41 = vsub.f32 2.0, %v126_v36 }
  0x26   :  { %v129_v42 = vsub.f32 2.0, %v127_v39 }
  0x27   :  { %v139_v43 = vadd.f32 %v121_v40, %v120_v38  ;;  %v130_v44 = vmul.f32 %v252_v32, %v128_v41 }
  0x28   :  { %v131_v45 = vmul.f32 %v254_v34, %v129_v42 }
  0x29   :  { %160 = vadd.xlane.f32.xlu0 %v139_v43  ;;  %v134_v46 = vmul.f32 %v244_v11, %v130_v44 }
  0x2a   :  { %v135_v47 = vmul.f32 %v246_v12, %v131_v45 }
  0x2b   :  { %v136_v48 = vsel %vm132_vm2, %v130_v44, %v134_v46 }
  0x2c   :  { %v137_v49 = vsel %vm133_vm3, %v131_v45, %v135_v47  ;;  %v151_v50 = vmul.f32 %v136_v48, %v288_v0 }
  0x2d   :  { %v143_v51 = vadd.f32 %v137_v49, %v136_v48  ;;  %v152_v52 = vmul.f32 %v137_v49, %v293_v1 }
  0x2f   :  { %172 = vadd.xlane.f32.xlu0 %v143_v51  ;;  %v153_v53 = vadd.f32 %v152_v52, %v151_v50 }
  0x31   :  { %196 = vadd.xlane.f32.xlu1 %v153_v53 }
  0x91   :  { %v185_v54 = vpop.xlane.xlu1 %184 }
  0x92   :  { %v186_v55 = vrot.slane %v185_v54, 4 }
  0x94   :  { %v187_v58 = vadd.f32 %v186_v55, %v185_v54 }
  0x96   :  { %v188_v61 = vrot.slane %v187_v58, 2 }
  0x98   :  { %v189_v6 = vadd.f32 %v188_v61, %v187_v58 }
  0x9a   :  { %v190_v11 = vrot.slane %v189_v6, 1 }
  0x9c   :  { %v191_v16 = vadd.f32 %v190_v11, %v189_v6 }
  0xb6   :  { %v161_v56 = vpop.xlane.xlu0 %160 }
  0xb7   :  { %v162_v57 = vrot.slane %v161_v56, 4 }
  0xb9   :  { %v163_v59 = vadd.f32 %v162_v57, %v161_v56 }
  0xbb   :  { %v164_v60 = vrot.slane %v163_v59, 2 }
  0xbc   :  { %v173_v62 = vpop.xlane.xlu0 %172 }
  0xbd   :  { %v174_v63 = vrot.slane %v173_v62, 4  ;;  %v165_v2 = vadd.f32 %v164_v60, %v163_v59 }
  0xbe   :  { %v197_v3 = vpop.xlane.xlu1 %196 }
  0xbf   :  { %v175_v4 = vadd.f32 %v174_v63, %v173_v62  ;;  %v198_v0 = vrot.slane %v197_v3, 4  ;;  %v166_v5 = vrot.slane %v165_v2, 1 }
  0xc1   :  { %v176_v1 = vrot.slane %v175_v4, 2  ;;  %v199_v7 = vadd.f32 %v198_v0, %v197_v3  ;;  %v167_v8 = vadd.f32 %v166_v5, %v165_v2 }
  0xc3   :  { %v177_v9 = vadd.f32 %v176_v1, %v175_v4  ;;  %v200_v10 = vrot.slane %v199_v7, 2  ;;  %234 = vpush %v167_v8 }
  0xc5   :  { %v201_v12 = vadd.f32 %v200_v10, %v199_v7  ;;  %v178_v13 = vrot.slane %v177_v9, 1 }
  0xc7   :  { %v179_v14 = vadd.f32 %v178_v13, %v177_v9  ;;  %v202_v15 = vrot.slane %v201_v12, 1 }
  0xc9   :  { %236 = vpush %v179_v14  ;;  %v203_v17 = vadd.f32 %v202_v15, %v201_v12 }
  0xca   :  { %238 = vpush %v191_v16 }
  0xcb   :  { %240 = vpush %v203_v17 }
  0xf4   :  { %s235_s0 = spop %234 }
  0xf5   :  { %170 = sst [smem:[#allocation6]] %s235_s0 }
  0xfa   :  { %s237_s19 = spop %236 }
  0xfb   :  { %182 = sst [smem:[#allocation6 + $0x1]] %s237_s19  ;;  %s239_s20 = spop %238 }
  0xfc   :  { %194 = sst [smem:[#allocation6 + $0x2]] %s239_s20  ;;  %s241_s21 = spop %240 }
  0xfd   :  { %206 = sst [smem:[#allocation6 + $0x3]] %s241_s21 }
  0xfe   :  { %266 = shalt.err (!%p263_p4)
}
  0xff   :  { %s269_s23 = smov [#allocation6]  }
 0x100   :  { %216 = dma.smem_to_vmem %s269_s23, 16, %s214_s18, [#allocation7]  }
 0x101   :  { %267 = dma.done.wait [#allocation7], 16  }
 0x102   :  { %268 = vsyncadd [#allocation7], 4294967280 }
 0x103   :  { %220 = sfence }
 0x104   :  { %221 = vsyncpa [#allocation7], 1 }

</bundles_post_ra>
